<compile_context>
chip_gen: v7x
topology: tpu7x:2x2x1
jax: 0.10.0
libtpu: 0.0.40
codegen_flags: <defaults>
</compile_context>

<pallas_src>
import jax
import jax.numpy as jnp
from jax.experimental import pallas as pl
from jax.experimental.pallas import tpu as pltpu


def _num_tensorcores():
    """Best-effort TensorCores-per-chip (2 on v7x, 1 on earlier generations)."""
    try:
        kind = jax.devices()[0].device_kind.lower()
        if "v7" in kind:
            return 2
    except Exception:
        pass
    return 1


def _make_kernel(tile_rows, lanes, rows, steps_per_shard, needs_mask):
    fold = tile_rows // 8

    def kernel(pred_ref, gt_ref, mask_ref, out_ref, num_acc, den_acc):
        i = pl.program_id(1)

        @pl.when(i == 0)
        def _init():
            num_acc[...] = jnp.zeros_like(num_acc)
            den_acc[...] = jnp.zeros_like(den_acc)

        # Cast in VMEM; HBM traffic stays in the inputs' native dtype.
        p = pred_ref[...].astype(jnp.float32)
        g = gt_ref[...].astype(jnp.float32)
        m = mask_ref[...].astype(jnp.float32)

        term = jnp.abs(p - g) * m

        if needs_mask:
            # Zero out rows past the end of the flat input. The ragged block's
            # out-of-bounds region may contain arbitrary bits (incl. NaN/Inf),
            # so mask `term` itself, not just `m`.
            row0 = (pl.program_id(0) * steps_per_shard + i) * tile_rows
            row_ids = row0 + jax.lax.broadcasted_iota(
                jnp.int32, (tile_rows, lanes), 0)
            valid = row_ids < rows
            term = jnp.where(valid, term, 0.0)
            m = jnp.where(valid, m, 0.0)

        # Fold the block down to (8, lanes) with pure-VPU adds before touching
        # the accumulators -> no full-tile accumulator RMW per step.
        num_acc[...] += jnp.sum(term.reshape(fold, 8, lanes), axis=0)
        den_acc[...] += jnp.sum(m.reshape(fold, 8, lanes), axis=0)

        @pl.when(i == pl.num_programs(1) - 1)
        def _finalize():
            out_ref[0, 0] = jnp.sum(num_acc[...])
            out_ref[0, 1] = jnp.sum(den_acc[...])

    return kernel


def mask_l1_loss(pred, gt, mask, eps=1e-6, block_elems=512 * 1024):
    """Matches MaskL1Loss.forward: sum(|pred-gt|*mask) / (sum(mask)+eps)."""
    # ocdnet calls this with (N, 1, H, W) probability maps; squeeze channels.
    if pred.ndim == 4:
        pred = pred[:, 0, :, :]
    if gt.ndim == 4:
        gt = gt[:, 0, :, :]
    if mask.ndim == 4:
        mask = mask[:, 0, :, :]
    assert pred.shape == gt.shape, (pred.shape, gt.shape)
    assert pred.shape == mask.shape, (pred.shape, mask.shape)

    total = int(pred.size)

    # Lane-dense slab: (rows, lanes) with lanes the largest multiple of 128
    # dividing the element count -> the reshape below is copy-free.
    lanes = next((c for c in (1024, 512, 256, 128) if total % c == 0), None)
    pad = 0
    if lanes is None:
        # Rare (total not a multiple of 128): append <=127 zeros, which are
        # neutral for both numerator and denominator.
        # TODO(synk): replace this copying pad with a JAX-side tail reduction.
        lanes = 128
        pad = (-total) % lanes
    rows = (total + pad) // lanes

    def _prep(x):
        flat = x.reshape(-1)                    # native dtype; metadata-only
        if pad:
            flat = jnp.pad(flat, (0, pad))
        return flat.reshape(rows, lanes)

    pred2, gt2, mask2 = _prep(pred), _prep(gt), _prep(mask)

    # Tile height: ~block_elems elements (~2 MiB f32) per input per grid step.
    rows_ceil8 = -(-rows // 8) * 8
    target_rows = max(8, (block_elems // lanes) // 8 * 8)

    # Prefer a tile height that exactly divides `rows` (no edge mask at all),
    # as long as blocks stay reasonably big (>= ~512 KiB f32).
    tile_rows = None
    min_tr = max(8, (131072 // lanes) // 8 * 8)
    start = (min(target_rows, rows) // 8) * 8
    for tr in range(start, min_tr - 1, -8):
        if tr > 0 and rows % tr == 0:
            tile_rows = tr
            break
    if tile_rows is None:
        tile_rows = min(target_rows, rows_ceil8)

    n_blocks = -(-rows // tile_rows)
    num_shards = min(_num_tensorcores(), n_blocks)   # 1 on v5e/v6e, 2 on v7x
    steps_per_shard = -(-n_blocks // num_shards)
    last_block = n_blocks - 1
    needs_mask = (num_shards * steps_per_shard * tile_rows) != rows

    # Clamp so a (fully masked) trailing block of the last shard never indexes
    # past the array; the in-kernel mask (based on the *nominal* block start)
    # zeroes its contribution.
    def idx(c, i):
        return (jnp.minimum(c * steps_per_shard + i, last_block), 0)

    in_spec = pl.BlockSpec((tile_rows, lanes), idx)

    if num_shards > 1:
        # Real 2-TensorCore split on v7x.
        sem = (pltpu.CORE_PARALLEL, "arbitrary")
    else:
        sem = ("arbitrary", "arbitrary")

    kernel = _make_kernel(tile_rows, lanes, rows, steps_per_shard, needs_mask)

    partials = pl.pallas_call(
        kernel,
        out_shape=jax.ShapeDtypeStruct((num_shards, 2), jnp.float32),
        grid_spec=pltpu.PrefetchScalarGridSpec(
            num_scalar_prefetch=0,
            grid=(num_shards, steps_per_shard),
            in_specs=[in_spec, in_spec, in_spec],
            out_specs=pl.BlockSpec((1, 2), lambda c, i: (c, 0),
                                   memory_space=pltpu.SMEM),
            scratch_shapes=[pltpu.VMEM((8, lanes), jnp.float32),
                            pltpu.VMEM((8, lanes), jnp.float32)],
        ),
        compiler_params=pltpu.CompilerParams(
            dimension_semantics=sem,
            vmem_limit_bytes=48 * 1024 * 1024,
        ),
    )(pred2, gt2, mask2)

    num = jnp.sum(partials[:, 0])
    den = jnp.sum(partials[:, 1])
    return num / (den + eps)


if __name__ == "__main__":
    key = jax.random.PRNGKey(0)
    k1, k2, k3 = jax.random.split(key, 3)

    N, H, W = 2, 16, 16
    # pred is a probability heatmap; gt and mask are binary maps.
    pred = jax.nn.sigmoid(jax.random.normal(k1, (N, 1, H, W), jnp.float32))
    gt = (jax.random.uniform(k2, (N, 1, H, W)) > 0.5).astype(jnp.float32)
    mask = (jax.random.uniform(k3, (N, H, W)) > 0.2).astype(jnp.float32)

    loss = mask_l1_loss(pred, gt, mask)
    loss = jax.block_until_ready(loss)

    # Plain-JAX reference (mirrors the PyTorch MaskL1Loss.forward).
    p, g = pred[:, 0], gt[:, 0]
    ref = jnp.sum(jnp.abs(p - g) * mask) / (jnp.sum(mask) + 1e-6)
    assert jnp.allclose(loss, ref, rtol=1e-5, atol=1e-6), (loss, ref)

    print("KERNEL_OK")
</pallas_src>

<mosaic_0001>
module attributes {stable_mosaic.version = 11 : i64} {
  func.func @kernel(%arg0: i32, %arg1: i32, %arg2: memref<8x512xf32, #tpu.memory_space<vmem>>, %arg3: memref<8x512xf32, #tpu.memory_space<vmem>>, %arg4: memref<8x512xf32, #tpu.memory_space<vmem>>, %arg5: memref<1x2xf32, #tpu.memory_space<smem>>, %arg6: memref<8x512xf32, #tpu.memory_space<vmem>>, %arg7: memref<8x512xf32, #tpu.memory_space<vmem>>) attributes {dimension_semantics = [#tpu.dimension_semantics<arbitrary>, #tpu.dimension_semantics<arbitrary>], iteration_bounds = array<i64: 1, 1>, scalar_prefetch = 0 : i64, scratch_operands = 2 : i64, tpu.core_type = #tpu.core_type<tc>, window_params = [{transform_indices = @transform_0, window_bounds = array<i64: 8, 512>}, {transform_indices = @transform_1, window_bounds = array<i64: 8, 512>}, {transform_indices = @transform_2, window_bounds = array<i64: 8, 512>}, {transform_indices = @transform_3, window_bounds = array<i64: 1, 2>}]} {
    %c0_i32 = arith.constant 0 : i32
    %0 = arith.cmpi eq, %arg1, %c0_i32 : i32
    %1 = arith.extui %0 : i1 to i32
    %c0_i32_0 = arith.constant 0 : i32
    %2 = arith.cmpi ne, %1, %c0_i32_0 : i32
    scf.if %2 {
      %cst_20 = arith.constant 0.000000e+00 : f32
      %34 = vector.broadcast %cst_20 : f32 to vector<8x512xf32>
      %c0_21 = arith.constant 0 : index
      %c0_22 = arith.constant 0 : index
      %35 = vector.load %arg6[%c0_21, %c0_22] : memref<8x512xf32, #tpu.memory_space<vmem>>, vector<8x512xf32>
      tpu.vector_store %arg6[%c0_21, %c0_22], %34 {strides = array<i32>} : memref<8x512xf32, #tpu.memory_space<vmem>>, vector<8x512xf32>,
      %cst_23 = arith.constant 0.000000e+00 : f32
      %36 = vector.broadcast %cst_23 : f32 to vector<8x512xf32>
      %c0_24 = arith.constant 0 : index
      %c0_25 = arith.constant 0 : index
      %37 = vector.load %arg7[%c0_24, %c0_25] : memref<8x512xf32, #tpu.memory_space<vmem>>, vector<8x512xf32>
      tpu.vector_store %arg7[%c0_24, %c0_25], %36 {strides = array<i32>} : memref<8x512xf32, #tpu.memory_space<vmem>>, vector<8x512xf32>,
    } else {
    }
    %c0 = arith.constant 0 : index
    %c0_1 = arith.constant 0 : index
    %3 = vector.load %arg2[%c0, %c0_1] : memref<8x512xf32, #tpu.memory_space<vmem>>, vector<8x512xf32>
    %c0_2 = arith.constant 0 : index
    %c0_3 = arith.constant 0 : index
    %4 = vector.load %arg3[%c0_2, %c0_3] : memref<8x512xf32, #tpu.memory_space<vmem>>, vector<8x512xf32>
    %c0_4 = arith.constant 0 : index
    %c0_5 = arith.constant 0 : index
    %5 = vector.load %arg4[%c0_4, %c0_5] : memref<8x512xf32, #tpu.memory_space<vmem>>, vector<8x512xf32>
    %6 = arith.subf %3, %4 : vector<8x512xf32>
    %7 = math.absf %6 : vector<8x512xf32>
    %8 = arith.mulf %7, %5 : vector<8x512xf32>
    %c1_i32 = arith.constant 1 : i32
    %9 = arith.muli %arg0, %c1_i32 : i32
    %10 = arith.addi %9, %arg1 : i32
    %c8_i32 = arith.constant 8 : i32
    %11 = arith.muli %10, %c8_i32 : i32
    %12 = tpu.iota {dimensions = array<i32: 0>} : vector<8x512xi32>
    %13 = vector.broadcast %11 : i32 to vector<8x512xi32>
    %14 = arith.addi %13, %12 : vector<8x512xi32>
    %c1_i32_6 = arith.constant 1 : i32
    %15 = vector.broadcast %c1_i32_6 : i32 to vector<8x512xi32>
    %16 = arith.cmpi slt, %14, %15 : vector<8x512xi32>
    %cst = arith.constant 0.000000e+00 : f32
    %17 = vector.broadcast %cst : f32 to vector<8x512xf32>
    %18 = arith.select %16, %8, %17 : vector<8x512xi1>, vector<8x512xf32>
    %cst_7 = arith.constant 0.000000e+00 : f32
    %19 = vector.broadcast %cst_7 : f32 to vector<8x512xf32>
    %20 = arith.select %16, %5, %19 : vector<8x512xi1>, vector<8x512xf32>
    %c0_8 = arith.constant 0 : index
    %c0_9 = arith.constant 0 : index
    %21 = vector.load %arg6[%c0_8, %c0_9] : memref<8x512xf32, #tpu.memory_space<vmem>>, vector<8x512xf32>
    %22 = vector.shape_cast %18 : vector<8x512xf32> to vector<1x8x512xf32>
    %cst_10 = arith.constant dense<0.000000e+00> : vector<8x512xf32>
    %23 = vector.multi_reduction <add>, %22, %cst_10 [0] : vector<1x8x512xf32> to vector<8x512xf32>
    %24 = arith.addf %21, %23 : vector<8x512xf32>
    %c0_11 = arith.constant 0 : index
    %c0_12 = arith.constant 0 : index
    %25 = vector.load %arg6[%c0_11, %c0_12] : memref<8x512xf32, #tpu.memory_space<vmem>>, vector<8x512xf32>
    tpu.vector_store %arg6[%c0_11, %c0_12], %24 {strides = array<i32>} : memref<8x512xf32, #tpu.memory_space<vmem>>, vector<8x512xf32>,
    %c0_13 = arith.constant 0 : index
    %c0_14 = arith.constant 0 : index
    %26 = vector.load %arg7[%c0_13, %c0_14] : memref<8x512xf32, #tpu.memory_space<vmem>>, vector<8x512xf32>
    %27 = vector.shape_cast %20 : vector<8x512xf32> to vector<1x8x512xf32>
    %cst_15 = arith.constant dense<0.000000e+00> : vector<8x512xf32>
    %28 = vector.multi_reduction <add>, %27, %cst_15 [0] : vector<1x8x512xf32> to vector<8x512xf32>
    %29 = arith.addf %26, %28 : vector<8x512xf32>
    %c0_16 = arith.constant 0 : index
    %c0_17 = arith.constant 0 : index
    %30 = vector.load %arg7[%c0_16, %c0_17] : memref<8x512xf32, #tpu.memory_space<vmem>>, vector<8x512xf32>
    tpu.vector_store %arg7[%c0_16, %c0_17], %29 {strides = array<i32>} : memref<8x512xf32, #tpu.memory_space<vmem>>, vector<8x512xf32>,
    %c0_i32_18 = arith.constant 0 : i32
    %31 = arith.cmpi eq, %arg1, %c0_i32_18 : i32
    %32 = arith.extui %31 : i1 to i32
    %c0_i32_19 = arith.constant 0 : i32
    %33 = arith.cmpi ne, %32, %c0_i32_19 : i32
    scf.if %33 {
      %c0_20 = arith.constant 0 : index
      %c0_21 = arith.constant 0 : index
      %34 = vector.load %arg6[%c0_20, %c0_21] : memref<8x512xf32, #tpu.memory_space<vmem>>, vector<8x512xf32>
      %35 = vector.shape_cast %34 : vector<8x512xf32> to vector<1x8x512xf32>
      %cst_22 = arith.constant dense<0.000000e+00> : vector<1xf32>
      %36 = vector.multi_reduction <add>, %35, %cst_22 [1, 2] : vector<1x8x512xf32> to vector<1xf32>
      %37 = vector.shape_cast %36 : vector<1xf32> to vector<1x1x1xf32>
      %38 = vector.extract %37[0, 0, 0] : f32 from vector<1x1x1xf32>
      %c0_23 = arith.constant 0 : index
      %c0_24 = arith.constant 0 : index
      %39 = memref.load %arg5[%c0_23, %c0_24] : memref<1x2xf32, #tpu.memory_space<smem>>
      memref.store %38, %arg5[%c0_23, %c0_24] : memref<1x2xf32, #tpu.memory_space<smem>>
      %c0_25 = arith.constant 0 : index
      %c0_26 = arith.constant 0 : index
      %40 = vector.load %arg7[%c0_25, %c0_26] : memref<8x512xf32, #tpu.memory_space<vmem>>, vector<8x512xf32>
      %41 = vector.shape_cast %40 : vector<8x512xf32> to vector<1x8x512xf32>
      %cst_27 = arith.constant dense<0.000000e+00> : vector<1xf32>
      %42 = vector.multi_reduction <add>, %41, %cst_27 [1, 2] : vector<1x8x512xf32> to vector<1xf32>
      %43 = vector.shape_cast %42 : vector<1xf32> to vector<1x1x1xf32>
      %44 = vector.extract %43[0, 0, 0] : f32 from vector<1x1x1xf32>
      %c0_28 = arith.constant 0 : index
      %c1 = arith.constant 1 : index
      %45 = memref.load %arg5[%c0_28, %c1] : memref<1x2xf32, #tpu.memory_space<smem>>
      memref.store %44, %arg5[%c0_28, %c1] : memref<1x2xf32, #tpu.memory_space<smem>>
    } else {
    }
    return
  }
  func.func @transform_0(%arg0: i32, %arg1: i32) -> (i32, i32) {
    %c1_i32 = arith.constant 1 : i32
    %0 = arith.muli %arg0, %c1_i32 : i32
    %1 = arith.addi %0, %arg1 : i32
    %c0_i32 = arith.constant 0 : i32
    %2 = arith.minsi %1, %c0_i32 : i32
    %c0_i32_0 = arith.constant 0 : i32
    %c0_i32_1 = arith.constant 0 : i32
    return %2, %c0_i32_0 : i32, i32
  }
  func.func @transform_1(%arg0: i32, %arg1: i32) -> (i32, i32) {
    %c1_i32 = arith.constant 1 : i32
    %0 = arith.muli %arg0, %c1_i32 : i32
    %1 = arith.addi %0, %arg1 : i32
    %c0_i32 = arith.constant 0 : i32
    %2 = arith.minsi %1, %c0_i32 : i32
    %c0_i32_0 = arith.constant 0 : i32
    %c0_i32_1 = arith.constant 0 : i32
    return %2, %c0_i32_0 : i32, i32
  }
  func.func @transform_2(%arg0: i32, %arg1: i32) -> (i32, i32) {
    %c1_i32 = arith.constant 1 : i32
    %0 = arith.muli %arg0, %c1_i32 : i32
    %1 = arith.addi %0, %arg1 : i32
    %c0_i32 = arith.constant 0 : i32
    %2 = arith.minsi %1, %c0_i32 : i32
    %c0_i32_0 = arith.constant 0 : i32
    %c0_i32_1 = arith.constant 0 : i32
    return %2, %c0_i32_0 : i32, i32
  }
  func.func @transform_3(%arg0: i32, %arg1: i32) -> (i32, i32) {
    %c0_i32 = arith.constant 0 : i32
    %c0_i32_0 = arith.constant 0 : i32
    return %arg0, %c0_i32 : i32, i32
  }
}

</mosaic_0001>

<bundles_post_ra>
// kernel: tpu_custom_call.1
= control target key start
LH: loop header
LB: loop body
LE: loop exit
PB: predicated region body
PF: predicated region fallthrough
CT: control target
= control target key end

     0   :  { %8 = vsyncpa [#allocation5], 0  ;;  %s639_s0 = inlined_call_operand.hbm [shape: f32[1,512], index: 0, kind: input, shape index: {}]   ;;  %s640_s1 = inlined_call_operand.hbm [shape: f32[1,512], index: 1, kind: input, shape index: {}]   ;;  %s641_s2 = inlined_call_operand.vmem [shape: f32[1,512], index: 2, kind: input, shape index: {}]   ;;  %s642_s3 = inlined_call_operand.hbm [shape: f32[1,2], index: 3, kind: output, shape index: {}]  }
   0x1   :  { %9 = vsyncpa [#allocation8], 0 }
   0x2   :  { %10 = vsyncpa [#allocation6], 0 }
   0x3   :  { %22 = vsyncadd [#allocation5], 448  ;;  %s533_s12 = smov [#allocation4]   ;;  %s473_s16 = scalar_lea.hbm %s639_s0, 64 }
   0x4   :  { %s28_s13 = sshll.u32 %s533_s12, 4  ;;  %p474_p0 = scmp.ne.s32.totalorder %s639_s0, %s473_s16  ;;  %s29_s13 = int_to_ptr.vmem [resolvable:$true] %s28_s13 }
   0x5   :  { %p477_p1 = scmp.lt.u32.totalorder %s473_s16, %s639_s0 }
   0x7   :  { %p479_p2 = pnand %p477_p1, %p474_p0 }
   0x9   :  { %482 = shalt.err (!%p479_p2)
}
   0xa   :  { %s483_s21 = scalar_lea.vmem %s29_s13, 64  ;;  %s487_s22 = scalar_lea.vmem %s29_s13, 512 }
   0xb   :  { %p484_p3 = scmp.ne.s32.totalorder %s29_s13, %s483_s21  ;;  %p488_p4 = scmp.lt.s32.totalorder %s29_s13, %s29_s13 }
   0xc   :  { %p489_p5 = scmp.lt.s32.totalorder %s487_s22, %s483_s21 }
   0xe   :  { %p490_p6 = por %p489_p5, %p488_p4 }
  0x10   :  { %p491_p7 = pnand %p490_p6, %p484_p3 }
  0x12   :  { %494 = shalt.err (!%p491_p7)
}
  0x13   :  { %s534_s23 = smov 64   ;;  %s535_s24 = smov 4  }
  0x14   :  { %34 = dma.hbm_to_vmem [thread:$0]  %s639_s0, 64, %s29_s13, [#allocation5], %s534_s23, %s534_s23, %s535_s24  }
  0x15   :  { %46 = vsyncadd [#allocation8], 448  ;;  %s536_s27 = smov [#allocation7]   ;;  %s495_s4 = scalar_lea.hbm %s640_s1, 64 }
  0x16   :  { %s52_s28 = sshll.u32 %s536_s27, 4  ;;  %p496_p8 = scmp.ne.s32.totalorder %s640_s1, %s495_s4  ;;  %s53_s28 = int_to_ptr.vmem [resolvable:$true] %s52_s28 }
  0x17   :  { %p499_p9 = scmp.lt.u32.totalorder %s495_s4, %s640_s1 }
  0x19   :  { %p501_p10 = pnand %p499_p9, %p496_p8 }
  0x1b   :  { %504 = shalt.err (!%p501_p10)
}
  0x1c   :  { %s505_s9 = scalar_lea.vmem %s53_s28, 64  ;;  %s509_s0 = scalar_lea.vmem %s53_s28, 512 }
  0x1d   :  { %p506_p11 = scmp.ne.s32.totalorder %s53_s28, %s505_s9  ;;  %p510_p12 = scmp.lt.s32.totalorder %s53_s28, %s53_s28 }
  0x1e   :  { %p511_p13 = scmp.lt.s32.totalorder %s509_s0, %s505_s9 }
  0x20   :  { %p512_p0 = por %p511_p13, %p510_p12 }
  0x22   :  { %p513_p1 = pnand %p512_p0, %p506_p11 }
  0x24   :  { %516 = shalt.err (!%p513_p1)
}
  0x25   :  { %58 = dma.hbm_to_vmem [thread:$0]  %s640_s1, 64, %s53_s28, [#allocation8], %s534_s23, %s534_s23, %s535_s24  }
  0x26   :  { %527 = dma.done.wait [#allocation5], 512  }
  0x27   :  { %528 = vsyncadd [#allocation5], 4294966784 }
  0x28   :  { %529 = dma.done.wait [#allocation8], 512  }
  0x29   :  { %530 = vsyncadd [#allocation8], 4294966784  ;;  %v190_v0 = vlaneseq  ;;  %v537_v2 = vmov 1966171168   ;;  %v140_v4 = vld [vmem:[#allocation4] sm:$0xf] }
  0x2a   :  { %v208_v3 = vunpack.c.l.s4 %v537_v2  ;;  %v141_v5 = vld [vmem:[#allocation4 + $0x4] sm:$0xf]  ;;  %v142_v6 = vld [vmem:[#allocation4 + $0x8] sm:$0xf]  ;;  %v143_v7 = vld [vmem:[#allocation4 + $0xc] sm:$0xf] }
  0x2b   :  { %v583_v1 = vshrl.u32 %v190_v0, 7  ;;  %v144_v8 = vld [vmem:[#allocation4 + $0x10] sm:$0xf]  ;;  %v145_v9 = vld [vmem:[#allocation4 + $0x14] sm:$0xf]  ;;  %s517_s30 = scalar_lea.hbm %s642_s3, 16 }
  0x2c   :  { %v146_v10 = vld [vmem:[#allocation4 + $0x18] sm:$0xf]  ;;  %v147_v11 = vld [vmem:[#allocation4 + $0x1c] sm:$0xf]  ;;  %v148_v12 = vld [vmem:[#allocation7] sm:$0xf]  ;;  %v209_v16 = vunpack.c.0.s8 %v208_v3  ;;  %p518_p2 = scmp.ne.s32.totalorder %s642_s3, %s517_s30  ;;  %p521_p3 = scmp.lt.u32.totalorder %s517_s30, %s642_s3 }
  0x2d   :  { %v149_v13 = vld [vmem:[#allocation7 + $0x4] sm:$0xf]  ;;  %v150_v14 = vld [vmem:[#allocation7 + $0x8] sm:$0xf]  ;;  %v151_v15 = vld [vmem:[#allocation7 + $0xc] sm:$0xf]  ;;  %v164_v20 = vsub.f32 %v140_v4, %v148_v12 }
  0x2e   :  { %v152_v17 = vld [vmem:[#allocation7 + $0x10] sm:$0xf]  ;;  %v153_v18 = vld [vmem:[#allocation7 + $0x14] sm:$0xf]  ;;  %v154_v19 = vld [vmem:[#allocation7 + $0x18] sm:$0xf]  ;;  %v165_v21 = vsub.f32 %v141_v5, %v149_v13  ;;  %v166_v22 = vsub.f32 %v142_v6, %v150_v14  ;;  %v167_v26 = vsub.f32 %v143_v7, %v151_v15  ;;  %v212_v37 = vsub.s32 %v209_v16, %v583_v1  ;;  %p523_p4 = pnand %p521_p3, %p518_p2 }
  0x2f   :  { %v155_v23 = vld [vmem:[#allocation7 + $0x1c] sm:$0xf]  ;;  %v156_v24 = vld [vmem:[%s641_s2] sm:$0xf]  ;;  %v157_v25 = vld [vmem:[%s641_s2 + $0x4] sm:$0xf]  ;;  %v168_v27 = vsub.f32 %v144_v8, %v152_v17  ;;  %v169_v28 = vsub.f32 %v145_v9, %v153_v18  ;;  %v170_v32 = vsub.f32 %v146_v10, %v154_v19 }
  0x30   :  { %v158_v29 = vld [vmem:[%s641_s2 + $0x8] sm:$0xf]  ;;  %v159_v30 = vld [vmem:[%s641_s2 + $0xc] sm:$0xf]  ;;  %v160_v31 = vld [vmem:[%s641_s2 + $0x10] sm:$0xf]  ;;  %v171_v33 = vsub.f32 %v147_v11, %v155_v23  ;;  %v287_v38 = vcombine.low %v156_v24, %v157_v25 }
  0x31   :  { %v161_v34 = vld [vmem:[%s641_s2 + $0x14] sm:$0xf]  ;;  %v162_v35 = vld [vmem:[%s641_s2 + $0x18] sm:$0xf]  ;;  %v163_v36 = vld [vmem:[%s641_s2 + $0x1c] sm:$0xf]  ;;  %v288_v39 = vcombine.low %v158_v29, %v159_v30 }
  0x32   :  { %v172_v40 = vand.u32 2147483647, %v164_v20  ;;  %v173_v41 = vand.u32 2147483647, %v165_v21  ;;  %v174_v42 = vand.u32 2147483647, %v166_v22  ;;  %v289_v43 = vcombine.low %v160_v31, %v161_v34 }
  0x33   :  { %v175_v44 = vand.u32 2147483647, %v167_v26  ;;  %v176_v45 = vand.u32 2147483647, %v168_v27  ;;  %v177_v46 = vand.u32 2147483647, %v169_v28  ;;  %v290_v47 = vcombine.low %v162_v35, %v163_v36 }
  0x34   :  { %v178_v48 = vand.u32 2147483647, %v170_v32  ;;  %v179_v49 = vand.u32 2147483647, %v171_v33  ;;  %v180_v50 = vmul.f32 %v172_v40, %v156_v24  ;;  %v181_v51 = vmul.f32 %v173_v41, %v157_v25 }
  0x35   :  { %v182_v52 = vmul.f32 %v174_v42, %v158_v29  ;;  %v183_v53 = vmul.f32 %v175_v44, %v159_v30  ;;  %v184_v54 = vmul.f32 %v176_v45, %v160_v31  ;;  %v185_v55 = vmul.f32 %v177_v46, %v161_v34 }
  0x36   :  { %v186_v56 = vmul.f32 %v178_v48, %v162_v35  ;;  %v187_v57 = vmul.f32 %v179_v49, %v163_v36  ;;  %v203_v58 = vcombine.low %v180_v50, %v181_v51  ;;  %v297_v59 = vrot.slane %v287_v38, %v212_v37 }
  0x37   :  { %v204_v60 = vcombine.low %v182_v52, %v183_v53  ;;  %v205_v61 = vcombine.low %v184_v54, %v185_v55  ;;  %v304_v62 = vrot.slane %v288_v39, %v212_v37  ;;  %v311_v63 = vrot.slane %v289_v43, %v212_v37 }
  0x38   :  { %v206_v0 = vcombine.low %v186_v56, %v187_v57  ;;  %v213_v2 = vrot.slane %v203_v58, %v212_v37  ;;  %v318_v3 = vrot.slane %v290_v47, %v212_v37  ;;  %vm194_vm0 = vcmp.lt.s32.totalorder %v583_v1, 1 }
  0x39   :  { %v220_v4 = vrot.slane %v204_v60, %v212_v37  ;;  %v227_v5 = vrot.slane %v205_v61, %v212_v37  ;;  %v319_v6 = vcombine.low %v297_v59, %v304_v62  ;;  %v320_v7 = vcombine.high %v297_v59, %v304_v62 }
  0x3a   :  { %v234_v8 = vrot.slane %v206_v0, %v212_v37  ;;  %v321_v9 = vcombine.low %v311_v63, %v318_v3  ;;  %v322_v10 = vcombine.high %v311_v63, %v318_v3 }
  0x3b   :  { %v235_v11 = vcombine.low %v213_v2, %v220_v4  ;;  %v236_v12 = vcombine.high %v213_v2, %v220_v4  ;;  %v329_v13 = vrot.slane %v319_v6, %v212_v37  ;;  %v336_v14 = vrot.slane %v320_v7, %v212_v37 }
  0x3c   :  { %v237_v15 = vcombine.low %v227_v5, %v234_v8  ;;  %v238_v16 = vcombine.high %v227_v5, %v234_v8  ;;  %v343_v17 = vrot.slane %v321_v9, %v212_v37  ;;  %v350_v18 = vrot.slane %v322_v10, %v212_v37 }
  0x3d   :  { %v245_v19 = vrot.slane %v235_v11, %v212_v37  ;;  %v252_v20 = vrot.slane %v236_v12, %v212_v37 }
  0x3e   :  { %v259_v21 = vrot.slane %v237_v15, %v212_v37  ;;  %v266_v22 = vrot.slane %v238_v16, %v212_v37  ;;  %v351_v23 = vcombine.low %v329_v13, %v343_v17  ;;  %v352_v24 = vcombine.high %v329_v13, %v343_v17 }
  0x3f   :  { %v353_v25 = vcombine.low %v336_v14, %v350_v18  ;;  %v354_v30 = vcombine.high %v336_v14, %v350_v18 }
  0x40   :  { %v267_v26 = vcombine.low %v245_v19, %v259_v21  ;;  %v268_v27 = vcombine.high %v245_v19, %v259_v21  ;;  %v269_v28 = vcombine.low %v252_v20, %v266_v22  ;;  %v270_v29 = vcombine.high %v252_v20, %v266_v22 }
  0x41   :  { %v359_v31 = vsel %vm194_vm0, %v351_v23, 0.0  ;;  %v360_v32 = vsel %vm194_vm0, %v353_v25, 0.0  ;;  %v361_v36 = vsel %vm194_vm0, %v352_v24, 0.0  ;;  %v362_v42 = vsel %vm194_vm0, %v354_v30, 0.0 }
  0x42   :  { %v275_v33 = vsel %vm194_vm0, %v267_v26, 0.0  ;;  %v276_v34 = vsel %vm194_vm0, %v269_v28, 0.0  ;;  %v277_v35 = vsel %vm194_vm0, %v268_v27, 0.0  ;;  %v420_v38 = vadd.f32 %v360_v32, %v359_v31 }
  0x43   :  { %v402_v37 = vadd.f32 %v276_v34, %v275_v33  ;;  %v278_v39 = vsel %vm194_vm0, %v270_v29, 0.0 }
  0x44   :  { %v421_v41 = vadd.f32 %v420_v38, %v361_v36 }
  0x45   :  { %v403_v40 = vadd.f32 %v402_v37, %v277_v35 }
  0x46   :  { %v422_v44 = vadd.f32 %v421_v41, %v362_v42 }
  0x47   :  { %v404_v43 = vadd.f32 %v403_v40, %v278_v39 }
  0x49   :  { %405 = vadd.xlane.f32.xlu0 %v404_v43 }
  0x4d   :  { %423 = vadd.xlane.f32.xlu0 %v422_v44 }
  0xd6   :  { %v406_v45 = vpop.xlane.xlu0 %405 }
  0xd7   :  { %v407_v46 = vrot.slane %v406_v45, 4 }
  0xd9   :  { %v408_v47 = vadd.f32 %v407_v46, %v406_v45 }
  0xda   :  { %v424_v48 = vpop.xlane.xlu0 %423 }
  0xdb   :  { %v409_v49 = vrot.slane %v408_v47, 2  ;;  %v425_v50 = vrot.slane %v424_v48, 4 }
  0xdd   :  { %v426_v51 = vadd.f32 %v425_v50, %v424_v48  ;;  %v410_v52 = vadd.f32 %v409_v49, %v408_v47 }
  0xdf   :  { %v427_v53 = vrot.slane %v426_v51, 2  ;;  %v411_v54 = vrot.slane %v410_v52, 1 }
  0xe1   :  { %v428_v55 = vadd.f32 %v427_v53, %v426_v51  ;;  %v412_v56 = vadd.f32 %v411_v54, %v410_v52 }
  0xe3   :  { %459 = vpush %v412_v56  ;;  %v429_v57 = vrot.slane %v428_v55, 1 }
  0xe5   :  { %v430_v1 = vadd.f32 %v429_v57, %v428_v55 }
  0xe7   :  { %461 = vpush %v430_v1 }
 0x114   :  { %s460_s2 = spop %459 }
 0x115   :  { %415 = sst [smem:[#allocation9]] %s460_s2 }
 0x118   :  { %s462_s27 = spop %461 }
 0x119   :  { %433 = sst [smem:[#allocation9 + $0x1]] %s462_s27 }
 0x11a   :  { %526 = shalt.err (!%p523_p4)
}
 0x11b   :  { %s538_s8 = smov [#allocation9]  }
 0x11c   :  { %441 = dma.smem_to_hbm %s538_s8, 16, %s642_s3, [#allocation6]  }
 0x11d   :  { %531 = dma.done.wait [#allocation6], 16  }
 0x11e   :  { %532 = vsyncadd [#allocation6], 4294967280 }
 0x11f   :  { %445 = sfence }
 0x120   :  { %446 = vsyncpa [#allocation5], 1 }
 0x121   :  { %447 = vsyncpa [#allocation8], 1 }
 0x122   :  { %448 = vsyncpa [#allocation6], 1 }

</bundles_post_ra>
